<compile_context>
chip_gen: v6e
topology: v6e:2x2x1
jax: 0.10.0
libtpu: 0.0.40
codegen_flags: <defaults>
</compile_context>

<pallas_src>
import jax
import jax.numpy as jnp
from jax.experimental import pallas as pl
from jax.experimental.pallas import tpu as pltpu


def _round_up(x, m):
    return (x + m - 1) // m * m


def value_net_kernel(x_ref, w1_ref, b1_ref, w2_ref, b2_ref, wv_ref, bv_ref, o_ref):
    # State tile arrives f32; cast to bf16 in-kernel (hides in VPU slack) so the
    # wrapper needs no standalone astype dispatch.
    x_bf = x_ref[...].astype(jnp.bfloat16)

    # fc1: bf16 operands into the MXU, f32 accumulation; bias + ReLU in f32.
    h1 = jnp.dot(x_bf, w1_ref[...], preferred_element_type=jnp.float32)
    h1 = jnp.maximum(h1 + b1_ref[...], 0.0)

    # fc2: feed bf16 activations back into the MXU, accumulate in f32.
    h2 = jnp.dot(h1.astype(jnp.bfloat16), w2_ref[...],
                 preferred_element_type=jnp.float32)
    h2 = jnp.maximum(h2 + b2_ref[...], 0.0)

    # v head (out dim = 1): VPU multiply + cross-lane reduce (XLU) instead of a
    # 1-wide MXU matmul.  bv is read as a scalar from SMEM.
    wv_row = wv_ref[...].astype(jnp.float32)                          # (1, fc2)
    v = jnp.sum(h2 * wv_row, axis=-1, keepdims=True) + bv_ref[0, 0]   # (bm, 1)
    o_ref[...] = v.astype(o_ref.dtype)


def prepare_params(w1, b1, w2, b2, wv, bv):
    """One-time layout/dtype prep: bf16 weights, f32 biases, wv as a lane-dense row,
    bv as a (1, 1) SMEM scalar.  Do this once at init; forward calls then have no
    per-call cast dispatches."""
    fc1 = w1.shape[1]
    fc2 = w2.shape[1]
    return dict(
        w1=w1.astype(jnp.bfloat16),
        b1=b1.reshape(1, fc1).astype(jnp.float32),
        w2=w2.astype(jnp.bfloat16),
        b2=b2.reshape(1, fc2).astype(jnp.float32),
        wv=wv.reshape(1, fc2).astype(jnp.bfloat16),
        bv=bv.reshape(1, 1).astype(jnp.float32),
    )


def value_network_forward(state, params, *, bm=512):
    """state: [B, D] float32; params from prepare_params().  Returns [B, 1] float32.

    Weights are stored as [in_features, out_features] (transposed vs. nn.Linear.weight).
    """
    B, D = state.shape
    fc1 = params["w1"].shape[1]
    fc2 = params["w2"].shape[1]

    # Batch tile: multiple of 128.  One tile covers small batches; for B > 128
    # cap bm so the grid has at least 2 programs (lets v7x's two TensorCores
    # share the work; negligible cost on single-TC v5e/v6e).
    bm = _round_up(max(1, min(bm, _round_up(B, 128))), 128)
    if B > 128:
        bm = min(bm, _round_up(pl.cdiv(B, 2), 128))
    grid = (pl.cdiv(B, bm),)

    out = pl.pallas_call(
        value_net_kernel,
        out_shape=jax.ShapeDtypeStruct((B, 1), jnp.float32),
        grid=grid,
        in_specs=[
            pl.BlockSpec((bm, D), lambda i: (i, 0)),             # state tile (f32)
            pl.BlockSpec((D, fc1), lambda i: (0, 0)),            # fc1 weight (bf16, invariant)
            pl.BlockSpec((1, fc1), lambda i: (0, 0)),            # fc1 bias (f32)
            pl.BlockSpec((fc1, fc2), lambda i: (0, 0)),          # fc2 weight (bf16, invariant)
            pl.BlockSpec((1, fc2), lambda i: (0, 0)),            # fc2 bias (f32)
            pl.BlockSpec((1, fc2), lambda i: (0, 0)),            # v weight, lane-dense row
            pl.BlockSpec(memory_space=pltpu.MemorySpace.SMEM),   # v bias scalar
        ],
        out_specs=pl.BlockSpec((bm, 1), lambda i: (i, 0)),
        compiler_params=pltpu.CompilerParams(
            dimension_semantics=("parallel",)),  # megacore-shardable when grid > 1
    )(state, params["w1"], params["b1"], params["w2"], params["b2"],
      params["wv"], params["bv"])

    return out


def init_params(key, input_dims, fc1_dims=256, fc2_dims=256):
    """Deterministic PyTorch-Linear-style init (uniform +/- 1/sqrt(fan_in)), f32."""
    ks = jax.random.split(key, 6)

    def lin(kw, kb, fan_in, fan_out):
        bound = 1.0 / jnp.sqrt(fan_in)
        w = jax.random.uniform(kw, (fan_in, fan_out), jnp.float32, -bound, bound)
        b = jax.random.uniform(kb, (1, fan_out), jnp.float32, -bound, bound)
        return w, b

    w1, b1 = lin(ks[0], ks[1], input_dims, fc1_dims)
    w2, b2 = lin(ks[2], ks[3], fc1_dims, fc2_dims)
    wv, bv = lin(ks[4], ks[5], fc2_dims, 1)
    return w1, b1, w2, b2, wv, bv


def reference_forward(state, w1, b1, w2, b2, wv, bv):
    """Full-f32 forward, identical math to the PyTorch module."""
    h1 = jnp.maximum(state @ w1 + b1, 0.0)
    h2 = jnp.maximum(h1 @ w2 + b2, 0.0)
    return h2 @ wv + bv


def reference_forward_bf16(state, w1, b1, w2, b2, wv, bv):
    """Reference that mirrors the kernel's bf16-operand / f32-accumulate recipe."""
    f32 = jnp.float32
    h1 = jnp.dot(state.astype(jnp.bfloat16), w1.astype(jnp.bfloat16),
                 preferred_element_type=f32)
    h1 = jnp.maximum(h1 + b1, 0.0)
    h2 = jnp.dot(h1.astype(jnp.bfloat16), w2.astype(jnp.bfloat16),
                 preferred_element_type=f32)
    h2 = jnp.maximum(h2 + b2, 0.0)
    wv_row = wv.reshape(1, -1).astype(jnp.bfloat16).astype(f32)
    return jnp.sum(h2 * wv_row, axis=-1, keepdims=True) + bv.reshape(1, 1)


if __name__ == "__main__":
    key = jax.random.PRNGKey(0)
    k_params, k_state = jax.random.split(key)

    B = 16            # batch of states
    INPUT_DIMS = 8    # state dimensionality (env observation size)
    FC1, FC2 = 256, 256

    w1, b1, w2, b2, wv, bv = init_params(k_params, INPUT_DIMS, FC1, FC2)
    params = prepare_params(w1, b1, w2, b2, wv, bv)   # one-time bf16 cast / layout
    state = jax.random.normal(k_state, (B, INPUT_DIMS), jnp.float32)

    v = value_network_forward(state, params)
    v = jax.block_until_ready(v)
    assert v.shape == (B, 1)

    # Tight check vs. a reference using the same bf16-operand / f32-accum recipe.
    v_match = reference_forward_bf16(state, w1, b1, w2, b2, wv, bv)
    assert jnp.allclose(v, v_match, atol=1e-3, rtol=1e-3)

    # Loose check vs. the full-f32 PyTorch-equivalent forward (bf16 rounding only).
    v_f32 = reference_forward(state, w1, b1, w2, b2, wv, bv)
    assert jnp.allclose(v, v_f32, atol=5e-2, rtol=5e-2)

    print("KERNEL_OK")
</pallas_src>

<mosaic_0001>
module attributes {stable_mosaic.version = 11 : i64} {
  func.func @value_net_kernel(%arg0: i32, %arg1: memref<128x8xf32, #tpu.memory_space<vmem>>, %arg2: memref<8x256xbf16, #tpu.memory_space<vmem>>, %arg3: memref<1x256xf32, #tpu.memory_space<vmem>>, %arg4: memref<256x256xbf16, #tpu.memory_space<vmem>>, %arg5: memref<1x256xf32, #tpu.memory_space<vmem>>, %arg6: memref<1x256xbf16, #tpu.memory_space<vmem>>, %arg7: memref<1x1xf32, #tpu.memory_space<smem>>, %arg8: memref<128x1xf32, #tpu.memory_space<vmem>>) attributes {dimension_semantics = [#tpu.dimension_semantics<parallel>], iteration_bounds = array<i64: 1>, scalar_prefetch = 0 : i64, scratch_operands = 0 : i64, tpu.core_type = #tpu.core_type<tc>, window_params = [{transform_indices = @transform_0, window_bounds = array<i64: 128, 8>}, {pipeline_mode = #tpu.pipeline_mode<synchronous>, transform_indices = @transform_1, window_bounds = array<i64: 8, 256>}, {pipeline_mode = #tpu.pipeline_mode<synchronous>, transform_indices = @transform_2, window_bounds = array<i64: 1, 256>}, {pipeline_mode = #tpu.pipeline_mode<synchronous>, transform_indices = @transform_3, window_bounds = array<i64: 256, 256>}, {pipeline_mode = #tpu.pipeline_mode<synchronous>, transform_indices = @transform_4, window_bounds = array<i64: 1, 256>}, {pipeline_mode = #tpu.pipeline_mode<synchronous>, transform_indices = @transform_5, window_bounds = array<i64: 1, 256>}, {transform_indices = @transform_6, window_bounds = array<i64: 1, 1>}, {transform_indices = @transform_7, window_bounds = array<i64: 128, 1>}]} {
    %c0 = arith.constant 0 : index
    %c0_0 = arith.constant 0 : index
    %0 = vector.load %arg1[%c0, %c0_0] : memref<128x8xf32, #tpu.memory_space<vmem>>, vector<128x8xf32>
    %1 = arith.truncf %0 : vector<128x8xf32> to vector<128x8xbf16>
    %c0_1 = arith.constant 0 : index
    %c0_2 = arith.constant 0 : index
    %2 = vector.load %arg2[%c0_1, %c0_2] : memref<8x256xbf16, #tpu.memory_space<vmem>>, vector<8x256xbf16>
    %cst = arith.constant dense<0.000000e+00> : vector<128x256xf32>
    %3 = tpu.matmul %1, %2, %cst {dimension_numbers = #tpu.dot_dimension_numbers<[1], [0], [0], [1], [0, 0, 1, 1], [], []>} : vector<128x8xbf16>, vector<8x256xbf16>, vector<128x256xf32> -> vector<128x256xf32>
    %c0_3 = arith.constant 0 : index
    %c0_4 = arith.constant 0 : index
    %4 = vector.load %arg3[%c0_3, %c0_4] : memref<1x256xf32, #tpu.memory_space<vmem>>, vector<1x256xf32>
    %5 = vector.broadcast %4 : vector<1x256xf32> to vector<128x256xf32>
    %6 = arith.addf %3, %5 : vector<128x256xf32>
    %cst_5 = arith.constant 0.000000e+00 : f32
    %7 = vector.broadcast %cst_5 : f32 to vector<128x256xf32>
    %8 = arith.maximumf %6, %7 : vector<128x256xf32>
    %9 = arith.truncf %8 : vector<128x256xf32> to vector<128x256xbf16>
    %c0_6 = arith.constant 0 : index
    %c0_7 = arith.constant 0 : index
    %10 = vector.load %arg4[%c0_6, %c0_7] : memref<256x256xbf16, #tpu.memory_space<vmem>>, vector<256x256xbf16>
    %cst_8 = arith.constant dense<0.000000e+00> : vector<128x256xf32>
    %11 = tpu.matmul %9, %10, %cst_8 {dimension_numbers = #tpu.dot_dimension_numbers<[1], [0], [0], [1], [0, 0, 1, 1], [], []>} : vector<128x256xbf16>, vector<256x256xbf16>, vector<128x256xf32> -> vector<128x256xf32>
    %c0_9 = arith.constant 0 : index
    %c0_10 = arith.constant 0 : index
    %12 = vector.load %arg5[%c0_9, %c0_10] : memref<1x256xf32, #tpu.memory_space<vmem>>, vector<1x256xf32>
    %13 = vector.broadcast %12 : vector<1x256xf32> to vector<128x256xf32>
    %14 = arith.addf %11, %13 : vector<128x256xf32>
    %cst_11 = arith.constant 0.000000e+00 : f32
    %15 = vector.broadcast %cst_11 : f32 to vector<128x256xf32>
    %16 = arith.maximumf %14, %15 : vector<128x256xf32>
    %c0_12 = arith.constant 0 : index
    %c0_13 = arith.constant 0 : index
    %17 = vector.load %arg6[%c0_12, %c0_13] : memref<1x256xbf16, #tpu.memory_space<vmem>>, vector<1x256xbf16>
    %18 = arith.extf %17 : vector<1x256xbf16> to vector<1x256xf32>
    %19 = vector.broadcast %18 : vector<1x256xf32> to vector<128x256xf32>
    %20 = arith.mulf %16, %19 : vector<128x256xf32>
    %cst_14 = arith.constant dense<0.000000e+00> : vector<128xf32>
    %21 = vector.multi_reduction <add>, %20, %cst_14 [1] : vector<128x256xf32> to vector<128xf32>
    %22 = vector.shape_cast %21 : vector<128xf32> to vector<128x1xf32>
    %c0_15 = arith.constant 0 : index
    %c0_16 = arith.constant 0 : index
    %23 = memref.load %arg7[%c0_15, %c0_16] : memref<1x1xf32, #tpu.memory_space<smem>>
    %24 = vector.broadcast %23 : f32 to vector<128x1xf32>
    %25 = arith.addf %22, %24 : vector<128x1xf32>
    %c0_17 = arith.constant 0 : index
    %c0_18 = arith.constant 0 : index
    %26 = vector.load %arg8[%c0_17, %c0_18] : memref<128x1xf32, #tpu.memory_space<vmem>>, vector<128x1xf32>
    tpu.vector_store %arg8[%c0_17, %c0_18], %25 {strides = array<i32>} : memref<128x1xf32, #tpu.memory_space<vmem>>, vector<128x1xf32>,
    return
  }
  func.func @transform_0(%arg0: i32) -> (i32, i32) {
    %c0_i32 = arith.constant 0 : i32
    %c0_i32_0 = arith.constant 0 : i32
    return %arg0, %c0_i32 : i32, i32
  }
  func.func @transform_1(%arg0: i32) -> (i32, i32) {
    %c0_i32 = arith.constant 0 : i32
    %c0_i32_0 = arith.constant 0 : i32
    %c0_i32_1 = arith.constant 0 : i32
    return %c0_i32, %c0_i32_0 : i32, i32
  }
  func.func @transform_2(%arg0: i32) -> (i32, i32) {
    %c0_i32 = arith.constant 0 : i32
    %c0_i32_0 = arith.constant 0 : i32
    %c0_i32_1 = arith.constant 0 : i32
    return %c0_i32, %c0_i32_0 : i32, i32
  }
  func.func @transform_3(%arg0: i32) -> (i32, i32) {
    %c0_i32 = arith.constant 0 : i32
    %c0_i32_0 = arith.constant 0 : i32
    %c0_i32_1 = arith.constant 0 : i32
    return %c0_i32, %c0_i32_0 : i32, i32
  }
  func.func @transform_4(%arg0: i32) -> (i32, i32) {
    %c0_i32 = arith.constant 0 : i32
    %c0_i32_0 = arith.constant 0 : i32
    %c0_i32_1 = arith.constant 0 : i32
    return %c0_i32, %c0_i32_0 : i32, i32
  }
  func.func @transform_5(%arg0: i32) -> (i32, i32) {
    %c0_i32 = arith.constant 0 : i32
    %c0_i32_0 = arith.constant 0 : i32
    %c0_i32_1 = arith.constant 0 : i32
    return %c0_i32, %c0_i32_0 : i32, i32
  }
  func.func @transform_6(%arg0: i32) -> (i32, i32) {
    %c0_i32 = arith.constant 0 : i32
    %c0_i32_0 = arith.constant 0 : i32
    %c0_i32_1 = arith.constant 0 : i32
    return %c0_i32, %c0_i32_0 : i32, i32
  }
  func.func @transform_7(%arg0: i32) -> (i32, i32) {
    %c0_i32 = arith.constant 0 : i32
    %c0_i32_0 = arith.constant 0 : i32
    return %arg0, %c0_i32 : i32, i32
  }
}

</mosaic_0001>

<bundles_post_ra>
// kernel: tpu_custom_call.1
= control target key start
LH: loop header
LB: loop body
LE: loop exit
PB: predicated region body
PF: predicated region fallthrough
CT: control target
= control target key end

     0   :  { %13 = vsyncpa [#allocation4], 0  ;;  %s959_s24 = smov [#allocation3]   ;;  %s1215_s0 = inlined_call_operand.vmem [shape: f32[16,8], index: 0, kind: input, shape index: {}]   ;;  %s1216_s1 = inlined_call_operand.vmem [shape: bf16[8,256], index: 1, kind: input, shape index: {}]   ;;  %s1217_s2 = inlined_call_operand.vmem [shape: f32[1,256], index: 2, kind: input, shape index: {}]   ;;  %s1218_s3 = inlined_call_operand.hbm [shape: bf16[256,256], index: 3, kind: input, shape index: {}]   ;;  %s1219_s4 = inlined_call_operand.vmem [shape: f32[1,256], index: 4, kind: input, shape index: {}]   ;;  %s1220_s5 = inlined_call_operand.vmem [shape: bf16[1,256], index: 5, kind: input, shape index: {}]   ;;  %s1221_s6 = inlined_call_operand.<no memory space> [shape: f32[1,1], index: 6, kind: input, shape index: {}]   ;;  %s1222_s7 = inlined_call_operand.vmem [shape: f32[16,1], index: 7, kind: output, shape index: {}]  }
   0x1   :  { %s25_s25 = sshll.u32 %s959_s24, 4  ;;  %s26_s25 = int_to_ptr.vmem [resolvable:$true] %s25_s25 }
   0x2   :  { %s945_s26 = scalar_lea.vmem %s26_s25, 4096  ;;  %p950_p1 = scmp.lt.s32.totalorder %s26_s25, %s26_s25 }
   0x3   :  { %p946_p0 = scmp.ne.s32.totalorder %s26_s25, %s945_s26  ;;  %p951_p2 = scmp.lt.s32.totalorder %s945_s26, %s945_s26 }
   0x5   :  { %p952_p3 = por %p951_p2, %p950_p1 }
   0x7   :  { %p953_p4 = pnand %p952_p3, %p946_p0 }
   0x9   :  { %956 = shalt.err (!%p953_p4)
}
   0xa   :  { %s960_s27 = smov 128   ;;  %s961_s28 = smov 8  }
   0xb   :  { %31 = dma.hbm_to_vmem [thread:$0]  %s1218_s3, 4096, %s26_s25, [#allocation4], %s960_s27, %s960_s27, %s961_s28  }
   0xc   :  { %957 = dma.done.wait [#allocation4], 4096  }
   0xd   :  { %958 = vsyncadd [#allocation4], 4294963200  ;;  %v962_v0 = vmov 0   ;;  %v66_v1 = vld [vmem:[%s1216_s1] sm:$0xff]  ;;  %vm109_vm0 = vcmask 1043456   ;;  %v43_v3 = vld [vmem:[%s1215_s0 + $0x8] sm:$0xff]  ;;  %v69_v61 = vlaneseq }
   0xe   :  { %148 = vmatprep.mubr.bf16.mxu0 %v962_v0  ;;  %v42_v2 = vld [vmem:[%s1215_s0] sm:$0xff]  ;;  %v809_v4 = vcombine.high %v66_v1, %v66_v1  ;;  %v808_v5 = vcombine.low %v66_v1, %v66_v1  ;;  %vm84_vm1 = vcmask 64512   ;;  %v44_v8 = vld [vmem:[%s1215_s0 + $0x10] sm:$0xff]  ;;  %v45_v11 = vld [vmem:[%s1215_s0 + $0x18] sm:$0xff]  ;;  %vm745_vm2 = vcmask 7168  }
   0xf   :  { %v58_v7 = vpack.c.bf16 %v43_v3, %v42_v2  ;;  %v889_v9 = vld [vmem:[#allocation3 + $0x70] ss:$8 sps:$4 sm:$0xff]   ;;  %v891_v10 = vld [vmem:[#allocation3 + $0x74] ss:$8 sps:$4 sm:$0xff]   ;;  %v894_v12 = vld [vmem:[#allocation3 + $0x64] ss:$8 sps:$4 sm:$0xff]   ;;  %v59_v15 = vpack.c.bf16 %v45_v11, %v44_v8 }
  0x10   :  { %810 = vmatprep.subr.msk.bf16.mxu0 %vm109_vm0, %v809_v4  ;;  %v111_v6 = vsel %vm109_vm0, %v808_v5, 0  ;;  %v892_v13 = vld [vmem:[#allocation3 + $0x60] ss:$8 sps:$4 sm:$0xff]   ;;  %851 = vmatprep.subr.bf16.mxu1 %v891_v10  ;;  %v897_v14 = vld [vmem:[#allocation3 + $0x54] ss:$8 sps:$4 sm:$0xff]   ;;  %v1073_v62 = vshrl.u32 %v69_v61, 7 }
  0x11   :  { %131 = vmatpush1.bf16.msra.mxu0 %v111_v6  ;;  %867 = vmatpush1.bf16.msra.mxu1 %v889_v9  ;;  %v895_v16 = vld [vmem:[#allocation3 + $0x50] ss:$8 sps:$4 sm:$0xff]   ;;  %v900_v17 = vld [vmem:[#allocation3 + $0x44] ss:$8 sps:$4 sm:$0xff]   ;;  %v898_v20 = vld [vmem:[#allocation3 + $0x40] ss:$8 sps:$4 sm:$0xff]  }
  0x12   :  { %481 = vmatprep.subr.bf16.mxu0 %v891_v10  ;;  %852 = vmatprep.subr.bf16.mxu1 %v894_v12  ;;  %v46_v18 = vld [vmem:[%s1215_s0 + $0x20] sm:$0xff]  ;;  %v47_v19 = vld [vmem:[%s1215_s0 + $0x28] sm:$0xff]  ;;  %v903_v21 = vld [vmem:[#allocation3 + $0x34] ss:$8 sps:$4 sm:$0xff]   ;;  %v75_v63 = vsub.s32 1, %v1073_v62 }
  0x13   :  { %v60_v22 = vpack.c.bf16 %v47_v19, %v46_v18  ;;  %v901_v23 = vld [vmem:[#allocation3 + $0x30] ss:$8 sps:$4 sm:$0xff]   ;;  %v906_v25 = vld [vmem:[#allocation3 + $0x24] ss:$8 sps:$4 sm:$0xff]   ;;  %v904_v27 = vld [vmem:[#allocation3 + $0x20] ss:$8 sps:$4 sm:$0xff]  }
  0x14   :  { %811 = vmatmul.mubr.msk.bf16.vlgmr.msra.gmra.mxu0 %vm84_vm1, %v58_v7  ;;  %v48_v24 = vld [vmem:[%s1215_s0 + $0x30] sm:$0xff]  ;;  %v49_v26 = vld [vmem:[%s1215_s0 + $0x38] sm:$0xff]  ;;  %v912_v31 = vld [vmem:[#allocation3 + $0x4] ss:$8 sps:$4 sm:$0xff]  }
  0x15   :  { %158 = vmatprep.mubr.bf16.mxu0 %v962_v0  ;;  %482 = vmatpush1.bf16.msra.mxu0 %v889_v9  ;;  %v909_v28 = vld [vmem:[#allocation3 + $0x14] ss:$8 sps:$4 sm:$0xff]   ;;  %v61_v29 = vpack.c.bf16 %v49_v26, %v48_v24  ;;  %v907_v30 = vld [vmem:[#allocation3 + $0x10] ss:$8 sps:$4 sm:$0xff]   ;;  %v50_v32 = vld [vmem:[%s1215_s0 + $0x40] sm:$0xff] }
  0x16   :  { %483 = vmatprep.subr.bf16.mxu0 %v894_v12  ;;  %868 = vmatpush1.bf16.msra.mxu1 %v892_v13  ;;  %v51_v33 = vld [vmem:[%s1215_s0 + $0x48] sm:$0xff]  ;;  %v915_v35 = vld [vmem:[#allocation3 + $0xf4] ss:$8 sps:$4 sm:$0xff]   ;;  %v913_v37 = vld [vmem:[#allocation3 + $0xf0] ss:$8 sps:$4 sm:$0xff]  }
  0x17   :  { %853 = vmatprep.subr.bf16.mxu1 %v897_v14  ;;  %v910_v34 = vld [vmem:[#allocation3] ss:$8 sps:$4 sm:$0xff]   ;;  %v62_v36 = vpack.c.bf16 %v51_v33, %v50_v32  ;;  %v918_v38 = vld [vmem:[#allocation3 + $0xe4] ss:$8 sps:$4 sm:$0xff]   ;;  %v52_v39 = vld [vmem:[%s1215_s0 + $0x50] sm:$0xff] }
  0x18   :  { %v53_v40 = vld [vmem:[%s1215_s0 + $0x58] sm:$0xff]  ;;  %v916_v41 = vld [vmem:[#allocation3 + $0xe0] ss:$8 sps:$4 sm:$0xff]   ;;  %v924_v45 = vld [vmem:[#allocation3 + $0xc4] ss:$8 sps:$4 sm:$0xff]  }
  0x19   :  { %484 = vmatpush1.bf16.msra.mxu0 %v892_v13  ;;  %v921_v42 = vld [vmem:[#allocation3 + $0xd4] ss:$8 sps:$4 sm:$0xff]   ;;  %v63_v43 = vpack.c.bf16 %v53_v40, %v52_v39  ;;  %v919_v44 = vld [vmem:[#allocation3 + $0xd0] ss:$8 sps:$4 sm:$0xff]   ;;  %v54_v46 = vld [vmem:[%s1215_s0 + $0x60] sm:$0xff] }
  0x1a   :  { %485 = vmatprep.subr.bf16.mxu0 %v897_v14  ;;  %869 = vmatpush1.bf16.msra.mxu1 %v895_v16  ;;  %v55_v47 = vld [vmem:[%s1215_s0 + $0x68] sm:$0xff]  ;;  %v927_v49 = vld [vmem:[#allocation3 + $0xb4] ss:$8 sps:$4 sm:$0xff]   ;;  %v925_v51 = vld [vmem:[#allocation3 + $0xb0] ss:$8 sps:$4 sm:$0xff]  }
  0x1b   :  { %854 = vmatprep.subr.bf16.mxu1 %v900_v17  ;;  %v922_v48 = vld [vmem:[#allocation3 + $0xc0] ss:$8 sps:$4 sm:$0xff]   ;;  %v64_v50 = vpack.c.bf16 %v55_v47, %v54_v46  ;;  %v56_v52 = vld [vmem:[%s1215_s0 + $0x70] sm:$0xff]  ;;  %v57_v53 = vld [vmem:[%s1215_s0 + $0x78] sm:$0xff] }
  0x1c   :  { %812 = vmatmul.mubr.msk.bf16.gmra.mxu0 %vm84_vm1, %v59_v15  ;;  %v65_v54 = vpack.c.bf16 %v57_v53, %v56_v52  ;;  %v930_v55 = vld [vmem:[#allocation3 + $0xa4] ss:$8 sps:$4 sm:$0xff]   ;;  %v928_v56 = vld [vmem:[#allocation3 + $0xa0] ss:$8 sps:$4 sm:$0xff]   ;;  %v933_v57 = vld [vmem:[#allocation3 + $0x94] ss:$8 sps:$4 sm:$0xff]  }
  0x1d   :  { %168 = vmatprep.mubr.bf16.mxu0 %v962_v0  ;;  %486 = vmatpush1.bf16.msra.mxu0 %v895_v16  ;;  %v931_v58 = vld [vmem:[#allocation3 + $0x90] ss:$8 sps:$4 sm:$0xff]   ;;  %v936_v59 = vld [vmem:[#allocation3 + $0x84] ss:$8 sps:$4 sm:$0xff]   ;;  %v934_v60 = vld [vmem:[#allocation3 + $0x80] ss:$8 sps:$4 sm:$0xff]  }
  0x1e   :  { %487 = vmatprep.subr.bf16.mxu0 %v900_v17  ;;  %870 = vmatpush1.bf16.msra.mxu1 %v898_v20  ;;  %v67_v1 = vld [vmem:[%s1217_s2] sm:$0x3] }
  0x1f   :  { %855 = vmatprep.subr.bf16.mxu1 %v903_v21  ;;  %v1084_v3 = vrot.slane %v67_v1, %v75_v63 }
  0x21   :  { %488 = vmatpush1.bf16.msra.mxu0 %v898_v20 }
  0x22   :  { %489 = vmatprep.subr.bf16.mxu0 %v903_v21  ;;  %871 = vmatpush1.bf16.msra.mxu1 %v901_v23 }
  0x23   :  { %856 = vmatprep.subr.bf16.mxu1 %v906_v25 }
  0x24   :  { %813 = vmatmul.mubr.msk.bf16.gmra.mxu0 %vm84_vm1, %v60_v22 }
  0x25   :  { %178 = vmatprep.mubr.bf16.mxu0 %v962_v0  ;;  %490 = vmatpush1.bf16.msra.mxu0 %v901_v23 }
  0x26   :  { %491 = vmatprep.subr.bf16.mxu0 %v906_v25  ;;  %872 = vmatpush1.bf16.msra.mxu1 %v904_v27 }
  0x27   :  { %857 = vmatprep.subr.bf16.mxu1 %v909_v28 }
  0x29   :  { %492 = vmatpush1.bf16.msra.mxu0 %v904_v27 }
  0x2a   :  { %493 = vmatprep.subr.bf16.mxu0 %v909_v28  ;;  %873 = vmatpush1.bf16.msra.mxu1 %v907_v30 }
  0x2b   :  { %858 = vmatprep.subr.bf16.mxu1 %v912_v31 }
  0x2c   :  { %814 = vmatmul.mubr.msk.bf16.gmra.mxu0 %vm84_vm1, %v61_v29 }
  0x2d   :  { %188 = vmatprep.mubr.bf16.mxu0 %v962_v0  ;;  %494 = vmatpush1.bf16.msra.mxu0 %v907_v30 }
  0x2e   :  { %495 = vmatprep.subr.bf16.mxu0 %v912_v31  ;;  %874 = vmatpush1.bf16.msra.mxu1 %v910_v34 }
  0x2f   :  { %859 = vmatprep.subr.bf16.mxu1 %v915_v35 }
  0x31   :  { %496 = vmatpush1.bf16.msra.mxu0 %v910_v34 }
  0x32   :  { %497 = vmatprep.subr.bf16.mxu0 %v915_v35  ;;  %875 = vmatpush2.bf16.msra.mxu1 %v913_v37 }
  0x33   :  { %860 = vmatprep.subr.bf16.mxu1 %v918_v38 }
  0x34   :  { %815 = vmatmul.mubr.msk.bf16.gmra.mxu0 %vm84_vm1, %v62_v36 }
  0x35   :  { %198 = vmatprep.mubr.bf16.mxu0 %v962_v0  ;;  %498 = vmatpush2.bf16.msra.mxu0 %v913_v37 }
  0x36   :  { %499 = vmatprep.subr.bf16.mxu0 %v918_v38  ;;  %876 = vmatpush2.bf16.msra.mxu1 %v916_v41 }
  0x37   :  { %861 = vmatprep.subr.bf16.mxu1 %v921_v42 }
  0x39   :  { %500 = vmatpush2.bf16.msra.mxu0 %v916_v41 }
  0x3a   :  { %501 = vmatprep.subr.bf16.mxu0 %v921_v42  ;;  %877 = vmatpush2.bf16.msra.mxu1 %v919_v44 }
  0x3b   :  { %862 = vmatprep.subr.bf16.mxu1 %v924_v45 }
  0x3c   :  { %816 = vmatmul.mubr.msk.bf16.gmra.mxu0 %vm84_vm1, %v63_v43 }
  0x3d   :  { %208 = vmatprep.mubr.bf16.mxu0 %v962_v0  ;;  %502 = vmatpush2.bf16.msra.mxu0 %v919_v44 }
  0x3e   :  { %503 = vmatprep.subr.bf16.mxu0 %v924_v45  ;;  %878 = vmatpush2.bf16.msra.mxu1 %v922_v48 }
  0x3f   :  { %863 = vmatprep.subr.bf16.mxu1 %v927_v49 }
  0x41   :  { %504 = vmatpush2.bf16.msra.mxu0 %v922_v48 }
  0x42   :  { %505 = vmatprep.subr.bf16.mxu0 %v927_v49  ;;  %879 = vmatpush2.bf16.msra.mxu1 %v925_v51 }
  0x43   :  { %864 = vmatprep.subr.bf16.mxu1 %v930_v55 }
  0x44   :  { %817 = vmatmul.mubr.msk.bf16.gmra.mxu0 %vm84_vm1, %v64_v50 }
  0x45   :  { %218 = vmatprep.mubr.bf16.mxu0 %v962_v0  ;;  %506 = vmatpush2.bf16.msra.mxu0 %v925_v51  ;;  %v1077_v0 = vsub.s32 0, %v1073_v62 }
  0x46   :  { %507 = vmatprep.subr.bf16.mxu0 %v930_v55  ;;  %880 = vmatpush2.bf16.msra.mxu1 %v928_v56 }
  0x47   :  { %865 = vmatprep.subr.bf16.mxu1 %v933_v57  ;;  %v1087_v4 = vrot.slane %v67_v1, %v1077_v0 }
  0x49   :  { %508 = vmatpush2.bf16.msra.mxu0 %v928_v56 }
  0x4a   :  { %509 = vmatprep.subr.bf16.mxu0 %v933_v57  ;;  %881 = vmatpush2.bf16.msra.mxu1 %v931_v58 }
  0x4b   :  { %866 = vmatprep.subr.bf16.mxu1 %v936_v59 }
  0x4c   :  { %818 = vmatmul.mubr.msk.bf16.gmra.mxu0 %vm84_vm1, %v65_v54 }
  0x4d   :  { %510 = vmatpush2.bf16.msra.mxu0 %v931_v58 }
  0x4e   :  { %511 = vmatprep.subr.bf16.mxu0 %v936_v59  ;;  %882 = vmatpush2.bf16.msra.mxu1 %v934_v60 }
  0x51   :  { %512 = vmatpush2.bf16.msra.mxu0 %v934_v60 }
  0xd4   :  { %v150_v2 = vpop.f32.mrf.mxu0 }
  0xd5   :  { %v151_v9 = vadd.f32 %v150_v2, %v1087_v4 }
  0xd6   :  { %v152_v5 = vpop.f32.mrf.mxu0 }
  0xd7   :  { %v153_v7 = vadd.f32 %v152_v5, %v1084_v3  ;;  %v229_v16 = vmax.f32 %v151_v9, 0.0 }
  0xd8   :  { %v154_v6 = vpop.f32.mrf.mxu0 }
  0xd9   :  { %v155_v8 = vadd.f32 %v154_v6, %v1087_v4  ;;  %v230_v14 = vmax.f32 %v153_v7, 0.0 }
  0xda   :  { %v156_v10 = vpop.f32.mrf.mxu0 }
  0xdb   :  { %v157_v11 = vadd.f32 %v156_v10, %v1084_v3  ;;  %v231_v12 = vmax.f32 %v155_v8, 0.0 }
  0xdc   :  { %v160_v13 = vpop.f32.mrf.mxu0 }
  0xdd   :  { %v232_v15 = vmax.f32 %v157_v11, 0.0  ;;  %v261_v19 = vpack.c.bf16 %v231_v12, %v229_v16  ;;  %v161_v23 = vadd.f32 %v160_v13, %v1087_v4 }
  0xde   :  { %v162_v17 = vpop.f32.mrf.mxu0 }
  0xdf   :  { %v262_v18 = vpack.c.bf16 %v232_v15, %v230_v14  ;;  %v163_v21 = vadd.f32 %v162_v17, %v1084_v3  ;;  %v233_v30 = vmax.f32 %v161_v23, 0.0 }
  0xe0   :  { %v164_v20 = vpop.f32.mrf.mxu0 }
  0xe1   :  { %v165_v22 = vadd.f32 %v164_v20, %v1087_v4  ;;  %513 = vmatprep.mubr.bf16.mxu0 %v262_v18  ;;  %v234_v28 = vmax.f32 %v163_v21, 0.0 }
  0xe2   :  { %v166_v24 = vpop.f32.mrf.mxu0  ;;  %514 = vmatmul.mubr.bf16.vlgmr.msra.gmra.mxu0 %v261_v19 }
  0xe3   :  { %v167_v25 = vadd.f32 %v166_v24, %v1084_v3  ;;  %v235_v26 = vmax.f32 %v165_v22, 0.0 }
  0xe4   :  { %v170_v27 = vpop.f32.mrf.mxu0 }
  0xe5   :  { %v236_v29 = vmax.f32 %v167_v25, 0.0  ;;  %v263_v33 = vpack.c.bf16 %v235_v26, %v233_v30  ;;  %v171_v37 = vadd.f32 %v170_v27, %v1087_v4 }
  0xe6   :  { %v172_v31 = vpop.f32.mrf.mxu0 }
  0xe7   :  { %v264_v32 = vpack.c.bf16 %v236_v29, %v234_v28  ;;  %v173_v35 = vadd.f32 %v172_v31, %v1084_v3  ;;  %v237_v44 = vmax.f32 %v171_v37, 0.0 }
  0xe8   :  { %v174_v34 = vpop.f32.mrf.mxu0 }
  0xe9   :  { %v175_v36 = vadd.f32 %v174_v34, %v1087_v4  ;;  %523 = vmatprep.mubr.bf16.mxu0 %v264_v32  ;;  %v238_v42 = vmax.f32 %v173_v35, 0.0 }
  0xea   :  { %v176_v38 = vpop.f32.mrf.mxu0  ;;  %524 = vmatmul.mubr.bf16.gmra.mxu0 %v263_v33 }
  0xeb   :  { %v177_v39 = vadd.f32 %v176_v38, %v1084_v3  ;;  %v239_v40 = vmax.f32 %v175_v36, 0.0 }
  0xec   :  { %v180_v41 = vpop.f32.mrf.mxu0 }
  0xed   :  { %v240_v43 = vmax.f32 %v177_v39, 0.0  ;;  %v265_v47 = vpack.c.bf16 %v239_v40, %v237_v44  ;;  %v181_v51 = vadd.f32 %v180_v41, %v1087_v4 }
  0xee   :  { %v182_v45 = vpop.f32.mrf.mxu0 }
  0xef   :  { %v266_v46 = vpack.c.bf16 %v240_v43, %v238_v42  ;;  %v183_v49 = vadd.f32 %v182_v45, %v1084_v3  ;;  %v241_v58 = vmax.f32 %v181_v51, 0.0 }
  0xf0   :  { %v184_v48 = vpop.f32.mrf.mxu0 }
  0xf1   :  { %v185_v50 = vadd.f32 %v184_v48, %v1087_v4  ;;  %533 = vmatprep.mubr.bf16.mxu0 %v266_v46  ;;  %v242_v56 = vmax.f32 %v183_v49, 0.0 }
  0xf2   :  { %v186_v52 = vpop.f32.mrf.mxu0  ;;  %534 = vmatmul.mubr.bf16.gmra.mxu0 %v265_v47 }
  0xf3   :  { %v187_v53 = vadd.f32 %v186_v52, %v1084_v3  ;;  %v243_v54 = vmax.f32 %v185_v50, 0.0 }
  0xf4   :  { %v190_v55 = vpop.f32.mrf.mxu0 }
  0xf5   :  { %v244_v57 = vmax.f32 %v187_v53, 0.0  ;;  %v267_v61 = vpack.c.bf16 %v243_v54, %v241_v58  ;;  %v191_v6 = vadd.f32 %v190_v55, %v1087_v4 }
  0xf6   :  { %v192_v59 = vpop.f32.mrf.mxu0 }
  0xf7   :  { %v268_v60 = vpack.c.bf16 %v244_v57, %v242_v56  ;;  %v193_v2 = vadd.f32 %v192_v59, %v1084_v3  ;;  %v245_v13 = vmax.f32 %v191_v6, 0.0  ;;  %v626_v57 = vld [vmem:[%s1220_s5] sm:$0x3]  ;;  %v635_v59 = vsub.s32 2, %v1073_v62 }
  0xf8   :  { %v194_v1 = vpop.f32.mrf.mxu0  ;;  %v627_v58 = vunpack.c.l.bf16 %v626_v57 }
  0xf9   :  { %v195_v5 = vadd.f32 %v194_v1, %v1087_v4  ;;  %543 = vmatprep.mubr.bf16.mxu1 %v268_v60  ;;  %v246_v11 = vmax.f32 %v193_v2, 0.0 }
  0xfa   :  { %v196_v7 = vpop.f32.mrf.mxu0  ;;  %544 = vmatmul.mubr.bf16.vlgmr.msra.gmra.mxu1 %v267_v61  ;;  %v632_v61 = vrot.slane %v627_v58, %v1077_v0  ;;  %v636_v1 = vrot.slane %v627_v58, %v635_v59 }
  0xfb   :  { %v197_v8 = vadd.f32 %v196_v7, %v1084_v3  ;;  %v247_v9 = vmax.f32 %v195_v5, 0.0 }
  0xfc   :  { %v200_v10 = vpop.f32.mrf.mxu0 }
  0xfd   :  { %v248_v12 = vmax.f32 %v197_v8, 0.0  ;;  %v269_v16 = vpack.c.bf16 %v247_v9, %v245_v13  ;;  %v201_v20 = vadd.f32 %v200_v10, %v1087_v4  ;;  %v1139_v9 = vrot.slane %v632_v61, %v1077_v0 }
  0xfe   :  { %v202_v14 = vpop.f32.mrf.mxu0  ;;  %v1142_v10 = vrot.slane %v636_v1, %v1077_v0 }
  0xff   :  { %v270_v15 = vpack.c.bf16 %v248_v12, %v246_v11  ;;  %v203_v18 = vadd.f32 %v202_v14, %v1084_v3  ;;  %v249_v27 = vmax.f32 %v201_v20, 0.0 }
 0x100   :  { %v204_v17 = vpop.f32.mrf.mxu0 }
 0x101   :  { %v205_v19 = vadd.f32 %v204_v17, %v1087_v4  ;;  %553 = vmatprep.mubr.bf16.mxu1 %v270_v15  ;;  %v250_v25 = vmax.f32 %v203_v18, 0.0 }
 0x102   :  { %v206_v21 = vpop.f32.mrf.mxu0  ;;  %554 = vmatmul.mubr.bf16.gmra.mxu1 %v269_v16 }
 0x103   :  { %v207_v22 = vadd.f32 %v206_v21, %v1084_v3  ;;  %v251_v23 = vmax.f32 %v205_v19, 0.0 }
 0x104   :  { %v210_v24 = vpop.f32.mrf.mxu0 }
 0x105   :  { %v252_v26 = vmax.f32 %v207_v22, 0.0  ;;  %v271_v30 = vpack.c.bf16 %v251_v23, %v249_v27  ;;  %v211_v34 = vadd.f32 %v210_v24, %v1087_v4 }
 0x106   :  { %v212_v28 = vpop.f32.mrf.mxu0 }
 0x107   :  { %v272_v29 = vpack.c.bf16 %v252_v26, %v250_v25  ;;  %v213_v32 = vadd.f32 %v212_v28, %v1084_v3  ;;  %v253_v41 = vmax.f32 %v211_v34, 0.0 }
 0x108   :  { %v214_v31 = vpop.f32.mrf.mxu0 }
 0x109   :  { %v215_v33 = vadd.f32 %v214_v31, %v1087_v4  ;;  %563 = vmatprep.mubr.bf16.mxu1 %v272_v29  ;;  %v254_v39 = vmax.f32 %v213_v32, 0.0 }
 0x10a   :  { %v216_v35 = vpop.f32.mrf.mxu0  ;;  %564 = vmatmul.mubr.bf16.gmra.mxu1 %v271_v30 }
 0x10b   :  { %v217_v36 = vadd.f32 %v216_v35, %v1084_v3  ;;  %v255_v37 = vmax.f32 %v215_v33, 0.0 }
 0x10c   :  { %v220_v38 = vpop.f32.mrf.mxu0 }
 0x10d   :  { %v256_v40 = vmax.f32 %v217_v36, 0.0  ;;  %v273_v44 = vpack.c.bf16 %v255_v37, %v253_v41  ;;  %v221_v48 = vadd.f32 %v220_v38, %v1087_v4 }
 0x10e   :  { %v222_v42 = vpop.f32.mrf.mxu0 }
 0x10f   :  { %v274_v43 = vpack.c.bf16 %v256_v40, %v254_v39  ;;  %v223_v46 = vadd.f32 %v222_v42, %v1084_v3  ;;  %v257_v54 = vmax.f32 %v221_v48, 0.0 }
 0x110   :  { %v224_v45 = vpop.f32.mrf.mxu0 }
 0x111   :  { %v225_v47 = vadd.f32 %v224_v45, %v1087_v4  ;;  %573 = vmatprep.mubr.bf16.mxu1 %v274_v43  ;;  %v258_v52 = vmax.f32 %v223_v46, 0.0  ;;  %v309_v4 = vld [vmem:[%s1219_s4] sm:$0x3] }
 0x112   :  { %v226_v49 = vpop.f32.mrf.mxu0  ;;  %574 = vmatmul.mubr.bf16.gmra.mxu1 %v273_v44  ;;  %v1133_v60 = vrot.slane %v309_v4, %v75_v63 }
 0x113   :  { %v227_v50 = vadd.f32 %v226_v49, %v1084_v3  ;;  %v259_v51 = vmax.f32 %v225_v47, 0.0  ;;  %v1129_v3 = vrot.slane %v309_v4, %v1077_v0 }
 0x115   :  { %v260_v53 = vmax.f32 %v227_v50, 0.0  ;;  %v275_v56 = vpack.c.bf16 %v259_v51, %v257_v54 }
 0x117   :  { %v276_v55 = vpack.c.bf16 %v260_v53, %v258_v52 }
 0x119   :  { %583 = vmatprep.mubr.bf16.mxu1 %v276_v55 }
 0x11a   :  { %584 = vmatmul.mubr.bf16.gmra.mxu1 %v275_v56 }
 0x1a2   :  { %v515_v2 = vpop.f32.mrf.mxu0 }
 0x1a3   :  { %v516_v5 = vadd.f32 %v515_v2, %v1129_v3 }
 0x1a4   :  { %v517_v6 = vpop.f32.mrf.mxu0 }
 0x1a5   :  { %v594_v7 = vmax.f32 %v516_v5, 0.0  ;;  %v518_v8 = vadd.f32 %v517_v6, %v1133_v60 }
 0x1a6   :  { %v519_v11 = vpop.f32.mrf.mxu0 }
 0x1a7   :  { %v595_v62 = vmax.f32 %v518_v8, 0.0  ;;  %v520_v63 = vadd.f32 %v519_v11, %v1129_v3  ;;  %v647_v15 = vmul.f32 %v1139_v9, %v594_v7 }
 0x1a8   :  { %v521_v12 = vpop.f32.mrf.mxu0 }
 0x1a9   :  { %v596_v13 = vmax.f32 %v520_v63, 0.0  ;;  %v522_v14 = vadd.f32 %v521_v12, %v1133_v60  ;;  %v648_v16 = vmul.f32 %v1142_v10, %v595_v62 }
 0x1aa   :  { %v525_v17 = vpop.f32.mrf.mxu0 }
 0x1ab   :  { %v597_v18 = vmax.f32 %v522_v14, 0.0  ;;  %v526_v19 = vadd.f32 %v525_v17, %v1129_v3  ;;  %v679_v20 = vadd.f32 %v648_v16, %v647_v15  ;;  %v649_v0 = vmul.f32 %v1139_v9, %v596_v13 }
 0x1ac   :  { %v527_v21 = vpop.f32.mrf.mxu0 }
 0x1ad   :  { %v650_v22 = vmul.f32 %v1142_v10, %v597_v18  ;;  %v598_v23 = vmax.f32 %v526_v19, 0.0  ;;  %v528_v24 = vadd.f32 %v527_v21, %v1133_v60  ;;  %680 = vadd.xlane.f32.xlu0 %v679_v20 }
 0x1ae   :  { %v529_v25 = vpop.f32.mrf.mxu0 }
 0x1af   :  { %v599_v26 = vmax.f32 %v528_v24, 0.0  ;;  %v530_v27 = vadd.f32 %v529_v25, %v1129_v3  ;;  %v682_v28 = vadd.f32 %v650_v22, %v649_v0  ;;  %v651_v32 = vmul.f32 %v1139_v9, %v598_v23 }
 0x1b0   :  { %v531_v29 = vpop.f32.mrf.mxu0 }
 0x1b1   :  { %v600_v30 = vmax.f32 %v530_v27, 0.0  ;;  %v532_v31 = vadd.f32 %v531_v29, %v1133_v60  ;;  %683 = vadd.xlane.f32.xlu0 %v682_v28  ;;  %v652_v33 = vmul.f32 %v1142_v10, %v599_v26 }
 0x1b2   :  { %v535_v34 = vpop.f32.mrf.mxu0 }
 0x1b3   :  { %v601_v35 = vmax.f32 %v532_v31, 0.0  ;;  %v536_v36 = vadd.f32 %v535_v34, %v1129_v3  ;;  %v685_v37 = vadd.f32 %v652_v33, %v651_v32  ;;  %v653_v39 = vmul.f32 %v1139_v9, %v600_v30 }
 0x1b4   :  { %v537_v38 = vpop.f32.mrf.mxu0 }
 0x1b5   :  { %v654_v40 = vmul.f32 %v1142_v10, %v601_v35  ;;  %v602_v41 = vmax.f32 %v536_v36, 0.0  ;;  %v538_v42 = vadd.f32 %v537_v38, %v1133_v60  ;;  %686 = vadd.xlane.f32.xlu1 %v685_v37 }
 0x1b6   :  { %v539_v43 = vpop.f32.mrf.mxu0 }
 0x1b7   :  { %v603_v44 = vmax.f32 %v538_v42, 0.0  ;;  %v540_v45 = vadd.f32 %v539_v43, %v1129_v3  ;;  %v688_v46 = vadd.f32 %v654_v40, %v653_v39  ;;  %v655_v48 = vmul.f32 %v1139_v9, %v602_v41 }
 0x1b8   :  { %v541_v47 = vpop.f32.mrf.mxu0 }
 0x1b9   :  { %v656_v49 = vmul.f32 %v1142_v10, %v603_v44  ;;  %v604_v50 = vmax.f32 %v540_v45, 0.0  ;;  %v542_v51 = vadd.f32 %v541_v47, %v1133_v60  ;;  %689 = vadd.xlane.f32.xlu1 %v688_v46 }
 0x1ba   :  { %v545_v52 = vpop.f32.mrf.mxu1 }
 0x1bb   :  { %v605_v53 = vmax.f32 %v542_v51, 0.0  ;;  %v546_v54 = vadd.f32 %v545_v52, %v1129_v3  ;;  %v691_v55 = vadd.f32 %v656_v49, %v655_v48  ;;  %v657_v57 = vmul.f32 %v1139_v9, %v604_v50 }
 0x1bc   :  { %v547_v56 = vpop.f32.mrf.mxu1 }
 0x1bd   :  { %v658_v4 = vmul.f32 %v1142_v10, %v605_v53  ;;  %v606_v58 = vmax.f32 %v546_v54, 0.0  ;;  %v548_v59 = vadd.f32 %v547_v56, %v1133_v60  ;;  %692 = vadd.xlane.f32.xlu0 %v691_v55 }
 0x1be   :  { %v549_v61 = vpop.f32.mrf.mxu1 }
 0x1bf   :  { %v607_v1 = vmax.f32 %v548_v59, 0.0  ;;  %v550_v2 = vadd.f32 %v549_v61, %v1129_v3  ;;  %v694_v5 = vadd.f32 %v658_v4, %v657_v57  ;;  %v659_v7 = vmul.f32 %v1139_v9, %v606_v58 }
 0x1c0   :  { %v551_v6 = vpop.f32.mrf.mxu1 }
 0x1c1   :  { %v660_v8 = vmul.f32 %v1142_v10, %v607_v1  ;;  %v608_v11 = vmax.f32 %v550_v2, 0.0  ;;  %v552_v62 = vadd.f32 %v551_v6, %v1133_v60  ;;  %695 = vadd.xlane.f32.xlu1 %v694_v5 }
 0x1c2   :  { %v555_v63 = vpop.f32.mrf.mxu1 }
 0x1c3   :  { %v609_v12 = vmax.f32 %v552_v62, 0.0  ;;  %v556_v13 = vadd.f32 %v555_v63, %v1129_v3  ;;  %v697_v14 = vadd.f32 %v660_v8, %v659_v7  ;;  %v661_v16 = vmul.f32 %v1139_v9, %v608_v11 }
 0x1c4   :  { %v557_v15 = vpop.f32.mrf.mxu1 }
 0x1c5   :  { %v662_v17 = vmul.f32 %v1142_v10, %v609_v12  ;;  %v610_v18 = vmax.f32 %v556_v13, 0.0  ;;  %v558_v19 = vadd.f32 %v557_v15, %v1133_v60  ;;  %698 = vadd.xlane.f32.xlu0 %v697_v14 }
 0x1c6   :  { %v559_v20 = vpop.f32.mrf.mxu1 }
 0x1c7   :  { %v611_v21 = vmax.f32 %v558_v19, 0.0  ;;  %v560_v0 = vadd.f32 %v559_v20, %v1129_v3  ;;  %v700_v22 = vadd.f32 %v662_v17, %v661_v16  ;;  %v663_v24 = vmul.f32 %v1139_v9, %v610_v18 }
 0x1c8   :  { %v561_v23 = vpop.f32.mrf.mxu1 }
 0x1c9   :  { %v664_v25 = vmul.f32 %v1142_v10, %v611_v21  ;;  %v612_v26 = vmax.f32 %v560_v0, 0.0  ;;  %v562_v27 = vadd.f32 %v561_v23, %v1133_v60  ;;  %701 = vadd.xlane.f32.xlu1 %v700_v22 }
 0x1ca   :  { %v565_v28 = vpop.f32.mrf.mxu1 }
 0x1cb   :  { %v613_v29 = vmax.f32 %v562_v27, 0.0  ;;  %v566_v30 = vadd.f32 %v565_v28, %v1129_v3  ;;  %v703_v31 = vadd.f32 %v664_v25, %v663_v24  ;;  %v665_v33 = vmul.f32 %v1139_v9, %v612_v26 }
 0x1cc   :  { %v567_v32 = vpop.f32.mrf.mxu1 }
 0x1cd   :  { %v666_v34 = vmul.f32 %v1142_v10, %v613_v29  ;;  %v614_v35 = vmax.f32 %v566_v30, 0.0  ;;  %v568_v36 = vadd.f32 %v567_v32, %v1133_v60  ;;  %704 = vadd.xlane.f32.xlu0 %v703_v31 }
 0x1ce   :  { %v569_v37 = vpop.f32.mrf.mxu1 }
 0x1cf   :  { %v615_v38 = vmax.f32 %v568_v36, 0.0  ;;  %v570_v39 = vadd.f32 %v569_v37, %v1129_v3  ;;  %v706_v40 = vadd.f32 %v666_v34, %v665_v33  ;;  %v667_v42 = vmul.f32 %v1139_v9, %v614_v35 }
 0x1d0   :  { %v571_v41 = vpop.f32.mrf.mxu1 }
 0x1d1   :  { %v668_v43 = vmul.f32 %v1142_v10, %v615_v38  ;;  %v616_v44 = vmax.f32 %v570_v39, 0.0  ;;  %v572_v45 = vadd.f32 %v571_v41, %v1133_v60  ;;  %707 = vadd.xlane.f32.xlu1 %v706_v40 }
 0x1d2   :  { %v575_v46 = vpop.f32.mrf.mxu1 }
 0x1d3   :  { %v617_v47 = vmax.f32 %v572_v45, 0.0  ;;  %v576_v48 = vadd.f32 %v575_v46, %v1129_v3  ;;  %v709_v49 = vadd.f32 %v668_v43, %v667_v42  ;;  %v669_v51 = vmul.f32 %v1139_v9, %v616_v44 }
 0x1d4   :  { %v577_v50 = vpop.f32.mrf.mxu1 }
 0x1d5   :  { %v670_v52 = vmul.f32 %v1142_v10, %v617_v47  ;;  %v618_v53 = vmax.f32 %v576_v48, 0.0  ;;  %v578_v54 = vadd.f32 %v577_v50, %v1133_v60  ;;  %710 = vadd.xlane.f32.xlu0 %v709_v49 }
 0x1d6   :  { %v579_v55 = vpop.f32.mrf.mxu1 }
 0x1d7   :  { %v619_v56 = vmax.f32 %v578_v54, 0.0  ;;  %v580_v57 = vadd.f32 %v579_v55, %v1129_v3  ;;  %v712_v4 = vadd.f32 %v670_v52, %v669_v51  ;;  %v671_v59 = vmul.f32 %v1139_v9, %v618_v53 }
 0x1d8   :  { %v581_v58 = vpop.f32.mrf.mxu1 }
 0x1d9   :  { %v672_v61 = vmul.f32 %v1142_v10, %v619_v56  ;;  %v620_v1 = vmax.f32 %v580_v57, 0.0  ;;  %v582_v2 = vadd.f32 %v581_v58, %v1133_v60  ;;  %713 = vadd.xlane.f32.xlu1 %v712_v4 }
 0x1da   :  { %v585_v5 = vpop.f32.mrf.mxu1 }
 0x1db   :  { %v621_v6 = vmax.f32 %v582_v2, 0.0  ;;  %v586_v7 = vadd.f32 %v585_v5, %v1129_v3  ;;  %v715_v8 = vadd.f32 %v672_v61, %v671_v59  ;;  %v673_v62 = vmul.f32 %v1139_v9, %v620_v1 }
 0x1dc   :  { %v587_v11 = vpop.f32.mrf.mxu1 }
 0x1dd   :  { %v674_v63 = vmul.f32 %v1142_v10, %v621_v6  ;;  %v622_v12 = vmax.f32 %v586_v7, 0.0  ;;  %v588_v13 = vadd.f32 %v587_v11, %v1133_v60  ;;  %716 = vadd.xlane.f32.xlu0 %v715_v8 }
 0x1de   :  { %v589_v14 = vpop.f32.mrf.mxu1 }
 0x1df   :  { %v623_v15 = vmax.f32 %v588_v13, 0.0  ;;  %v590_v16 = vadd.f32 %v589_v14, %v1129_v3  ;;  %v718_v17 = vadd.f32 %v674_v63, %v673_v62  ;;  %v675_v19 = vmul.f32 %v1139_v9, %v622_v12 }
 0x1e0   :  { %v591_v18 = vpop.f32.mrf.mxu1  ;;  %v728_v3 = vstv %s1221_s6 }
 0x1e1   :  { %v676_v20 = vmul.f32 %v1142_v10, %v623_v15  ;;  %v624_v21 = vmax.f32 %v590_v16, 0.0  ;;  %v592_v0 = vadd.f32 %v591_v18, %v1133_v60  ;;  %719 = vadd.xlane.f32.xlu1 %v718_v17 }
 0x1e3   :  { %v625_v22 = vmax.f32 %v592_v0, 0.0  ;;  %v721_v23 = vadd.f32 %v676_v20, %v675_v19  ;;  %v677_v24 = vmul.f32 %v1139_v9, %v624_v21 }
 0x1e5   :  { %v678_v25 = vmul.f32 %v1142_v10, %v625_v22  ;;  %722 = vadd.xlane.f32.xlu0 %v721_v23 }
 0x1e7   :  { %v724_v26 = vadd.f32 %v678_v25, %v677_v24 }
 0x1e9   :  { %725 = vadd.xlane.f32.xlu1 %v724_v26 }
 0x236   :  { %v681_v27 = vpop.xlane.xlu0 %680 }
 0x237   :  { %v729_v28 = vadd.f32 %v728_v3, %v681_v27 }
 0x239   :  { %746 = vst.msk [vmem:[#allocation5] sm:$0xff] %vm745_vm2, %v729_v28 }
 0x23a   :  { %v684_v29 = vpop.xlane.xlu0 %683 }
 0x23b   :  { %v730_v60 = vadd.f32 %v728_v3, %v684_v29 }
 0x23d   :  { %747 = vst.msk [vmem:[#allocation5 + $0x8] sm:$0xff] %vm745_vm2, %v730_v60 }
 0x23e   :  { %v687_v30 = vpop.xlane.xlu1 %686 }
 0x240   :  { %v794_v31 = vld [vmem:[#allocation5] sm:$0xff] }
 0x241   :  { %795 = vst [vmem:[%s1222_s7] sm:$0xff] %v794_v31 }
 0x242   :  { %v690_v9 = vpop.xlane.xlu1 %689 }
 0x244   :  { %v796_v10 = vld [vmem:[#allocation5 + $0x8] sm:$0xff] }
 0x245   :  { %797 = vst [vmem:[%s1222_s7 + $0x8] sm:$0xff] %v796_v10 }
 0x246   :  { %v693_v32 = vpop.xlane.xlu0 %692 }
 0x24a   :  { %v696_v33 = vpop.xlane.xlu1 %695 }
 0x24e   :  { %v699_v34 = vpop.xlane.xlu0 %698 }
 0x252   :  { %v702_v35 = vpop.xlane.xlu1 %701 }
 0x256   :  { %v705_v36 = vpop.xlane.xlu0 %704 }
 0x25a   :  { %v708_v37 = vpop.xlane.xlu1 %707 }
 0x25e   :  { %v711_v38 = vpop.xlane.xlu0 %710 }
 0x262   :  { %v714_v39 = vpop.xlane.xlu1 %713 }
 0x266   :  { %v717_v40 = vpop.xlane.xlu0 %716 }
 0x26a   :  { %v720_v41 = vpop.xlane.xlu1 %719 }
 0x26e   :  { %v723_v42 = vpop.xlane.xlu0 %722 }
 0x272   :  { %v726_v43 = vpop.xlane.xlu1 %725 }
 0x273   :  { %803 = vsyncpa [#allocation4], 1 }

</bundles_post_ra>
